<compile_context>
chip_gen: v7x
topology: tpu7x:2x2x1
jax: 0.10.0
libtpu: 0.0.40
codegen_flags: <defaults>
</compile_context>

<pallas_src>
import jax
import jax.numpy as jnp
from jax.experimental import pallas as pl
from jax.experimental.pallas import tpu as pltpu

KS = (1, 2, 3, 4, 5)   # conv kernel heights (over the sequence axis)
NK = len(KS)
E_PAD = 128            # emb dim 100 padded to a lane multiple
C_PAD = 128            # conv out-channels 80 padded to a lane multiple
NEG = -1e30            # additive mask value for invalid max-pool positions


def dilated_cnn_kernel(slab_ref, w_ref, b_ref, m_ref, out_ref):
    """Fused conv(1..5) + bias + ReLU + masked max-pool + tanh.

    slab_ref : (B*S_pad, NK*E_PAD)  bf16  im2col slab (5 shifted emb copies)
    w_ref    : (NK*E_PAD, NK*C_PAD) bf16  packed block conv weights (zero padded)
    b_ref    : (1, NK*C_PAD)        f32   concatenated biases (zero in padding)
    m_ref    : (S_pad, NK*C_PAD)    f32   additive mask: 0 valid, NEG invalid
    out_ref  : (B, NK*C_PAD)        f32
    """
    B, _ = out_ref.shape
    S_pad = m_ref.shape[0]

    # One MXU matmul covering all batches x positions x 5 conv widths.
    acc = jnp.dot(slab_ref[...], w_ref[...],
                  preferred_element_type=jnp.float32)        # (B*S_pad, N) f32
    acc = jnp.maximum(acc + b_ref[...], 0.0)                 # bias + ReLU (hoisted, f32)

    pooled = []
    for b in range(B):                                       # B tiny & static -> unrolled
        seg = acc[b * S_pad:(b + 1) * S_pad, :] + m_ref[...]  # sublane-aligned view + mask
        pooled.append(jnp.max(seg, axis=0, keepdims=True))   # (1, N) global max-pool
    out_ref[...] = jnp.tanh(jnp.concatenate(pooled, axis=0))  # single lane-dense store


def dilated_cnn_forward(embedded, weights, biases):
    """embedded: (B, S, E) f32; weights[i]: (K_i, E, C); biases[i]: (C,)."""
    B, S, E = embedded.shape
    C = weights[0].shape[-1]
    assert S >= max(KS), "sequence must be at least as long as the widest conv"
    S_pad = ((S + 7) // 8) * 8

    # ---- host-side layout plumbing (everything (8,128)-aligned, bf16 MXU ops) ----
    # Zero-padded embedding buffer with NK-1 extra rows so shifted views stay in-bounds.
    emb_pad = jnp.zeros((B, S_pad + NK - 1, E_PAD), jnp.float32)
    emb_pad = emb_pad.at[:, :S, :E].set(embedded)
    # im2col slab: column block j holds emb shifted by j positions.
    slab = jnp.concatenate([emb_pad[:, j:j + S_pad, :] for j in range(NK)], axis=-1)
    slab = slab.reshape(B * S_pad, NK * E_PAD).astype(jnp.bfloat16)

    # Packed block weight: conv i reads shift blocks j < K_i, writes channel block i.
    w_blk = jnp.zeros((NK * E_PAD, NK * C_PAD), jnp.float32)
    b_row = jnp.zeros((1, NK * C_PAD), jnp.float32)
    for i, K in enumerate(KS):
        for j in range(K):
            w_blk = w_blk.at[j * E_PAD:j * E_PAD + E,
                             i * C_PAD:i * C_PAD + C].set(weights[i][j])
        b_row = b_row.at[0, i * C_PAD:i * C_PAD + C].set(biases[i])
    w_blk = w_blk.astype(jnp.bfloat16)

    # Additive validity mask: position t valid for conv K iff t < S - K + 1.
    t = jnp.arange(S_pad)[:, None]
    mask = jnp.concatenate(
        [jnp.broadcast_to(jnp.where(t < (S - K + 1), 0.0, NEG), (S_pad, C_PAD))
         for K in KS], axis=1).astype(jnp.float32)            # (S_pad, NK*C_PAD)

    out_pad = pl.pallas_call(
        dilated_cnn_kernel,
        out_shape=jax.ShapeDtypeStruct((B, NK * C_PAD), jnp.float32),
        in_specs=[pl.BlockSpec(memory_space=pltpu.MemorySpace.VMEM)] * 4,
        out_specs=pl.BlockSpec(memory_space=pltpu.MemorySpace.VMEM),
    )(slab, w_blk, b_row, mask)

    # Strip channel padding and keep the PyTorch concat order (conv_1 .. conv_5).
    return jnp.concatenate([out_pad[:, i * C_PAD:i * C_PAD + C] for i in range(NK)],
                           axis=1)                            # (B, NK*C)


def reference_forward(embedded, weights, biases):
    """Pure-JAX f32 reference of the same forward pass."""
    outs = []
    for i, K in enumerate(KS):
        T = embedded.shape[1] - K + 1
        win = jnp.stack([embedded[:, k:k + T, :] for k in range(K)], axis=2)  # (B,T,K,E)
        conv = jnp.einsum('btke,kec->btc', win, weights[i],
                          preferred_element_type=jnp.float32) + biases[i]
        conv = jnp.maximum(conv, 0.0)
        outs.append(jnp.max(conv, axis=1))                                    # (B, C)
    return jnp.tanh(jnp.concatenate(outs, axis=1))


if __name__ == "__main__":
    # Module hyperparameters implied by __init__/forward:
    # conv width is 100 -> emb_size must be 100; out channels per conv = 80.
    vocab_size, emb_size = 50, 100
    B, S, C = 2, 8, 80

    key = jax.random.PRNGKey(0)
    k_emb, k_x, *k_ws = jax.random.split(key, 2 + len(KS))

    # Deterministic parameter init (synthetic, not a checkpoint load).
    emb_table = 0.1 * jax.random.normal(k_emb, (vocab_size, emb_size), jnp.float32)
    emb_table = emb_table.at[0].set(0.0)   # padding_idx=0 -> zero row

    weights, biases = [], []
    for i, K in enumerate(KS):
        kw, kb = jax.random.split(k_ws[i])
        fan_in = K * emb_size
        weights.append(jax.random.normal(kw, (K, emb_size, C), jnp.float32)
                       * (1.0 / fan_in ** 0.5))
        biases.append(0.01 * jax.random.normal(kb, (C,), jnp.float32))

    # Token ids (B, S) int32.
    x_input = jax.random.randint(k_x, (B, S), 0, vocab_size, dtype=jnp.int32)

    # Glue in plain JAX: embedding lookup (gather). Dropout is identity in eval mode.
    # TODO(synk): training-mode dropout (p=0.25) not implemented; forward assumes eval.
    embedded = emb_table[x_input]          # (B, S, E) f32

    out = dilated_cnn_forward(embedded, weights, biases)
    out = jax.block_until_ready(out)

    expected = reference_forward(embedded, weights, biases)
    assert out.shape == (B, C * len(KS))
    assert jnp.allclose(out, expected, atol=1e-2, rtol=1e-2), \
        f"max abs err {jnp.max(jnp.abs(out - expected))}"

    print("KERNEL_OK")
</pallas_src>

<mosaic_0001>
module attributes {stable_mosaic.version = 11 : i64} {
  func.func @dilated_cnn_kernel(%arg0: memref<16x640xbf16, #tpu.memory_space<vmem>>, %arg1: memref<640x640xbf16, #tpu.memory_space<vmem>>, %arg2: memref<1x640xf32, #tpu.memory_space<vmem>>, %arg3: memref<8x640xf32, #tpu.memory_space<vmem>>, %arg4: memref<2x640xf32, #tpu.memory_space<vmem>>) attributes {dimension_semantics = [], scalar_prefetch = 0 : i64, scratch_operands = 0 : i64, tpu.core_type = #tpu.core_type<tc>} {
    %c0 = arith.constant 0 : index
    %c0_0 = arith.constant 0 : index
    %0 = vector.load %arg0[%c0, %c0_0] : memref<16x640xbf16, #tpu.memory_space<vmem>>, vector<16x640xbf16>
    %c0_1 = arith.constant 0 : index
    %c0_2 = arith.constant 0 : index
    %1 = vector.load %arg1[%c0_1, %c0_2] : memref<640x640xbf16, #tpu.memory_space<vmem>>, vector<640x640xbf16>
    %cst = arith.constant dense<0.000000e+00> : vector<16x640xf32>
    %2 = tpu.matmul %0, %1, %cst {dimension_numbers = #tpu.dot_dimension_numbers<[1], [0], [0], [1], [0, 0, 1, 1], [], []>} : vector<16x640xbf16>, vector<640x640xbf16>, vector<16x640xf32> -> vector<16x640xf32>
    %c0_3 = arith.constant 0 : index
    %c0_4 = arith.constant 0 : index
    %3 = vector.load %arg2[%c0_3, %c0_4] : memref<1x640xf32, #tpu.memory_space<vmem>>, vector<1x640xf32>
    %4 = vector.broadcast %3 : vector<1x640xf32> to vector<16x640xf32>
    %5 = arith.addf %2, %4 : vector<16x640xf32>
    %cst_5 = arith.constant 0.000000e+00 : f32
    %6 = vector.broadcast %cst_5 : f32 to vector<16x640xf32>
    %7 = arith.maximumf %5, %6 : vector<16x640xf32>
    %8 = vector.extract_strided_slice %7 {offsets = [0, 0], sizes = [8, 640], strides = [1, 1]} : vector<16x640xf32> to vector<8x640xf32>
    %c0_6 = arith.constant 0 : index
    %c0_7 = arith.constant 0 : index
    %9 = vector.load %arg3[%c0_6, %c0_7] : memref<8x640xf32, #tpu.memory_space<vmem>>, vector<8x640xf32>
    %10 = arith.addf %8, %9 : vector<8x640xf32>
    %cst_8 = arith.constant dense<0xFF800000> : vector<640xf32>
    %11 = vector.multi_reduction <maximumf>, %10, %cst_8 [0] : vector<8x640xf32> to vector<640xf32>
    %12 = vector.shape_cast %11 : vector<640xf32> to vector<1x640xf32>
    %13 = vector.extract_strided_slice %7 {offsets = [8, 0], sizes = [8, 640], strides = [1, 1]} : vector<16x640xf32> to vector<8x640xf32>
    %c0_9 = arith.constant 0 : index
    %c0_10 = arith.constant 0 : index
    %14 = vector.load %arg3[%c0_9, %c0_10] : memref<8x640xf32, #tpu.memory_space<vmem>>, vector<8x640xf32>
    %15 = arith.addf %13, %14 : vector<8x640xf32>
    %cst_11 = arith.constant dense<0xFF800000> : vector<640xf32>
    %16 = vector.multi_reduction <maximumf>, %15, %cst_11 [0] : vector<8x640xf32> to vector<640xf32>
    %17 = vector.shape_cast %16 : vector<640xf32> to vector<1x640xf32>
    %18 = tpu.concatenate %12, %17 in 0 : vector<1x640xf32>, vector<1x640xf32> -> vector<2x640xf32>
    %19 = math.tanh %18 : vector<2x640xf32>
    %c0_12 = arith.constant 0 : index
    %c0_13 = arith.constant 0 : index
    %20 = vector.load %arg4[%c0_12, %c0_13] : memref<2x640xf32, #tpu.memory_space<vmem>>, vector<2x640xf32>
    tpu.vector_store %arg4[%c0_12, %c0_13], %19 {strides = array<i32>} : memref<2x640xf32, #tpu.memory_space<vmem>>, vector<2x640xf32>,
    return
  }
}

</mosaic_0001>

<bundles_post_ra>
// kernel: tpu_custom_call.1
= control target key start
LH: loop header
LB: loop body
LE: loop exit
PB: predicated region body
PF: predicated region fallthrough
CT: control target
= control target key end

     0   :  { %9 = vsyncpa [#allocation3], 0  ;;  %s2765_s0 = inlined_call_operand.hbm [shape: bf16[16,640], index: 0, kind: input, shape index: {}]   ;;  %s2766_s1 = inlined_call_operand.hbm [shape: bf16[640,640], index: 1, kind: input, shape index: {}]   ;;  %s2767_s2 = inlined_call_operand.vmem [shape: f32[1,640], index: 2, kind: input, shape index: {}]   ;;  %s2768_s3 = inlined_call_operand.hbm [shape: f32[8,640], index: 3, kind: input, shape index: {}]   ;;  %s2769_s4 = inlined_call_operand.hbm [shape: f32[2,640], index: 4, kind: output, shape index: {}]  }
   0x1   :  { %10 = vsyncpa [#allocation6], 0 }
   0x2   :  { %11 = vsyncpa [#allocation4], 0  ;;  %s2627_s15 = smov [#allocation5]   ;;  %s2628_s17 = smov [#allocation2]  }
   0x3   :  { %s29_s16 = sshll.u32 %s2627_s15, 4  ;;  %s17_s18 = sshll.u32 %s2628_s17, 4  ;;  %s30_s16 = int_to_ptr.vmem [resolvable:$true] %s29_s16  ;;  %s2662_s18 = int_to_ptr.vmem [resolvable:$true] %s17_s18 }
   0x4   :  { %s2533_s21 = scalar_lea.hbm %s2766_s1, 25600 }
   0x5   :  { %p2534_p0 = scmp.ne.s32.totalorder %s2766_s1, %s2533_s21  ;;  %p2537_p1 = scmp.lt.u32.totalorder %s2533_s21, %s2766_s1 }
   0x7   :  { %p2539_p2 = pnand %p2537_p1, %p2534_p0 }
   0x9   :  { %2542 = shalt.err (!%p2539_p2)
}
   0xa   :  { %s2543_s26 = scalar_lea.vmem %s30_s16, 25600  ;;  %p2548_p4 = scmp.lt.s32.totalorder %s30_s16, %s30_s16 }
   0xb   :  { %p2544_p3 = scmp.ne.s32.totalorder %s30_s16, %s2543_s26  ;;  %p2549_p5 = scmp.lt.s32.totalorder %s2543_s26, %s2543_s26 }
   0xd   :  { %p2550_p6 = por %p2549_p5, %p2548_p4 }
   0xf   :  { %p2551_p7 = pnand %p2550_p6, %p2544_p3 }
  0x11   :  { %2554 = shalt.err (!%p2551_p7)
}
  0x12   :  { %s2629_s27 = smov 320   ;;  %s2630_s28 = smov 20  }
  0x13   :  { %35 = dma.hbm_to_vmem [thread:$0]  %s2766_s1, 25600, %s30_s16, [#allocation6], %s2629_s27, %s2629_s27, %s2630_s28  }
  0x14   :  { %s2555_s7 = scalar_lea.hbm %s2765_s0, 640 }
  0x15   :  { %p2556_p8 = scmp.ne.s32.totalorder %s2765_s0, %s2555_s7  ;;  %p2559_p9 = scmp.lt.u32.totalorder %s2555_s7, %s2765_s0 }
  0x17   :  { %p2561_p10 = pnand %p2559_p9, %p2556_p8 }
  0x19   :  { %2564 = shalt.err (!%p2561_p10)
}
  0x1a   :  { %s2565_s12 = scalar_lea.vmem %s2662_s18, 640  ;;  %p2570_p12 = scmp.lt.s32.totalorder %s2662_s18, %s2662_s18 }
  0x1b   :  { %p2566_p11 = scmp.ne.s32.totalorder %s2662_s18, %s2565_s12  ;;  %p2571_p13 = scmp.lt.s32.totalorder %s2565_s12, %s2565_s12 }
  0x1d   :  { %p2572_p0 = por %p2571_p13, %p2570_p12 }
  0x1f   :  { %p2573_p1 = pnand %p2572_p0, %p2566_p11 }
  0x21   :  { %2576 = shalt.err (!%p2573_p1)
}
  0x22   :  { %23 = dma.hbm_to_vmem [thread:$0]  %s2765_s0, 640, %s2662_s18, [#allocation3], %s2629_s27, %s2629_s27, %s2630_s28  }
  0x23   :  { %s2631_s14 = smov [#allocation7]   ;;  %s2577_s19 = scalar_lea.hbm %s2768_s3, 640 }
  0x24   :  { %s44_s15 = sshll.u32 %s2631_s14, 4  ;;  %p2578_p2 = scmp.ne.s32.totalorder %s2768_s3, %s2577_s19  ;;  %s45_s15 = int_to_ptr.vmem [resolvable:$true] %s44_s15 }
  0x25   :  { %p2581_p3 = scmp.lt.u32.totalorder %s2577_s19, %s2768_s3 }
  0x27   :  { %p2583_p4 = pnand %p2581_p3, %p2578_p2 }
  0x29   :  { %2586 = shalt.err (!%p2583_p4)
}
  0x2a   :  { %s2587_s24 = scalar_lea.vmem %s45_s15, 640  ;;  %p2592_p6 = scmp.lt.s32.totalorder %s45_s15, %s45_s15 }
  0x2b   :  { %p2588_p5 = scmp.ne.s32.totalorder %s45_s15, %s2587_s24  ;;  %p2593_p7 = scmp.lt.s32.totalorder %s2587_s24, %s2587_s24 }
  0x2d   :  { %p2594_p8 = por %p2593_p7, %p2592_p6 }
  0x2f   :  { %p2595_p9 = pnand %p2594_p8, %p2588_p5 }
  0x31   :  { %2598 = shalt.err (!%p2595_p9)
}
  0x32   :  { %47 = dma.hbm_to_vmem [thread:$0]  %s2768_s3, 640, %s45_s15, [#allocation6]  }
  0x33   :  { %2621 = dma.done.wait [#allocation3], 640  }
  0x34   :  { %2622 = vsyncadd [#allocation3], 4294966656 }
  0x35   :  { %2623 = dma.done.wait [#allocation6], 26240  }
  0x36   :  { %2624 = vsyncadd [#allocation6], 4294941056  ;;  %v2236_v0 = vld [vmem:[#allocation5 + $0x4] ss:$20 sps:$4 sm:$0xff]   ;;  %v2238_v1 = vld [vmem:[#allocation5 + $0xc] ss:$20 sps:$4 sm:$0xff]  }
  0x37   :  { %1397 = vmatprep.subr.bf16.mxu0 %v2236_v0  ;;  %v2240_v2 = vld [vmem:[#allocation5] ss:$20 sps:$4 sm:$0xff]   ;;  %v2241_v3 = vld [vmem:[#allocation5 + $0x8] ss:$20 sps:$4 sm:$0xff]   ;;  %1526 = vmatprep.subr.bf16.mxu1 %v2238_v1  ;;  %v2247_v7 = vld [vmem:[#allocation5 + $0x30] ss:$20 sps:$4 sm:$0xff]  }
  0x38   :  { %v2242_v4 = vld [vmem:[#allocation5 + $0x2c] ss:$20 sps:$4 sm:$0xff]   ;;  %1398 = vmatpush1.bf16.msra.mxu0 %v2240_v2  ;;  %1527 = vmatpush1.bf16.msra.mxu1 %v2241_v3  ;;  %v2244_v5 = vld [vmem:[#allocation5 + $0x34] ss:$20 sps:$4 sm:$0xff]   ;;  %v2250_v9 = vld [vmem:[#allocation5 + $0x5c] ss:$20 sps:$4 sm:$0xff]  }
  0x39   :  { %v2246_v6 = vld [vmem:[#allocation5 + $0x28] ss:$20 sps:$4 sm:$0xff]   ;;  %1399 = vmatprep.subr.bf16.mxu0 %v2242_v4  ;;  %1528 = vmatprep.subr.bf16.mxu1 %v2244_v5  ;;  %v2252_v10 = vld [vmem:[#allocation5 + $0x50] ss:$20 sps:$4 sm:$0xff]   ;;  %v2253_v11 = vld [vmem:[#allocation5 + $0x58] ss:$20 sps:$4 sm:$0xff]  }
  0x3a   :  { %v2248_v8 = vld [vmem:[#allocation5 + $0x54] ss:$20 sps:$4 sm:$0xff]   ;;  %v2254_v12 = vld [vmem:[#allocation5 + $0x7c] ss:$20 sps:$4 sm:$0xff]   ;;  %v2256_v13 = vld [vmem:[#allocation5 + $0x84] ss:$20 sps:$4 sm:$0xff]  }
  0x3b   :  { %v2258_v14 = vld [vmem:[#allocation5 + $0x78] ss:$20 sps:$4 sm:$0xff]   ;;  %v2259_v15 = vld [vmem:[#allocation5 + $0x80] ss:$20 sps:$4 sm:$0xff]   ;;  %v2265_v19 = vld [vmem:[#allocation5 + $0xa8] ss:$20 sps:$4 sm:$0xff]  }
  0x3c   :  { %1400 = vmatpush1.bf16.msra.mxu0 %v2246_v6  ;;  %1529 = vmatpush1.bf16.msra.mxu1 %v2247_v7  ;;  %v2260_v16 = vld [vmem:[#allocation5 + $0xa4] ss:$20 sps:$4 sm:$0xff]   ;;  %v2262_v17 = vld [vmem:[#allocation5 + $0xac] ss:$20 sps:$4 sm:$0xff]   ;;  %v2268_v21 = vld [vmem:[#allocation5 + $0xd4] ss:$20 sps:$4 sm:$0xff]  }
  0x3d   :  { %1401 = vmatprep.subr.bf16.mxu0 %v2248_v8  ;;  %1530 = vmatprep.subr.bf16.mxu1 %v2250_v9  ;;  %v2264_v18 = vld [vmem:[#allocation5 + $0xa0] ss:$20 sps:$4 sm:$0xff]   ;;  %v2270_v22 = vld [vmem:[#allocation5 + $0xc8] ss:$20 sps:$4 sm:$0xff]   ;;  %v2271_v23 = vld [vmem:[#allocation5 + $0xd0] ss:$20 sps:$4 sm:$0xff]  }
  0x3e   :  { %v2266_v20 = vld [vmem:[#allocation5 + $0xcc] ss:$20 sps:$4 sm:$0xff]   ;;  %v2272_v24 = vld [vmem:[#allocation5 + $0xf4] ss:$20 sps:$4 sm:$0xff]   ;;  %v2274_v25 = vld [vmem:[#allocation5 + $0xfc] ss:$20 sps:$4 sm:$0xff]  }
  0x3f   :  { %v2276_v26 = vld [vmem:[#allocation5 + $0xf0] ss:$20 sps:$4 sm:$0xff]   ;;  %v2277_v27 = vld [vmem:[#allocation5 + $0xf8] ss:$20 sps:$4 sm:$0xff]   ;;  %v2283_v31 = vld [vmem:[#allocation5 + $0x120] ss:$20 sps:$4 sm:$0xff]  }
  0x40   :  { %1402 = vmatpush1.bf16.msra.mxu0 %v2252_v10  ;;  %1531 = vmatpush1.bf16.msra.mxu1 %v2253_v11  ;;  %v2278_v28 = vld [vmem:[#allocation5 + $0x11c] ss:$20 sps:$4 sm:$0xff]   ;;  %v2280_v29 = vld [vmem:[#allocation5 + $0x124] ss:$20 sps:$4 sm:$0xff]   ;;  %v2286_v33 = vld [vmem:[#allocation5 + $0x14c] ss:$20 sps:$4 sm:$0xff]  }
  0x41   :  { %1403 = vmatprep.subr.bf16.mxu0 %v2254_v12  ;;  %1532 = vmatprep.subr.bf16.mxu1 %v2256_v13  ;;  %v2282_v30 = vld [vmem:[#allocation5 + $0x118] ss:$20 sps:$4 sm:$0xff]   ;;  %v2288_v34 = vld [vmem:[#allocation5 + $0x140] ss:$20 sps:$4 sm:$0xff]   ;;  %v2289_v35 = vld [vmem:[#allocation5 + $0x148] ss:$20 sps:$4 sm:$0xff]  }
  0x42   :  { %v2284_v32 = vld [vmem:[#allocation5 + $0x144] ss:$20 sps:$4 sm:$0xff]   ;;  %v2290_v36 = vld [vmem:[#allocation5 + $0x16c] ss:$20 sps:$4 sm:$0xff]   ;;  %v2292_v37 = vld [vmem:[#allocation5 + $0x174] ss:$20 sps:$4 sm:$0xff]  }
  0x43   :  { %v2294_v38 = vld [vmem:[#allocation5 + $0x168] ss:$20 sps:$4 sm:$0xff]   ;;  %v2295_v39 = vld [vmem:[#allocation5 + $0x170] ss:$20 sps:$4 sm:$0xff]   ;;  %v2301_v43 = vld [vmem:[#allocation5 + $0x198] ss:$20 sps:$4 sm:$0xff]  }
  0x44   :  { %1404 = vmatpush1.bf16.msra.mxu0 %v2258_v14  ;;  %1533 = vmatpush1.bf16.msra.mxu1 %v2259_v15  ;;  %v2296_v40 = vld [vmem:[#allocation5 + $0x194] ss:$20 sps:$4 sm:$0xff]   ;;  %v2298_v41 = vld [vmem:[#allocation5 + $0x19c] ss:$20 sps:$4 sm:$0xff]   ;;  %v2304_v45 = vld [vmem:[#allocation5 + $0x1c4] ss:$20 sps:$4 sm:$0xff]  }
  0x45   :  { %1405 = vmatprep.subr.bf16.mxu0 %v2260_v16  ;;  %1534 = vmatprep.subr.bf16.mxu1 %v2262_v17  ;;  %v2300_v42 = vld [vmem:[#allocation5 + $0x190] ss:$20 sps:$4 sm:$0xff]   ;;  %v2306_v46 = vld [vmem:[#allocation5 + $0x1b8] ss:$20 sps:$4 sm:$0xff]   ;;  %v2307_v48 = vld [vmem:[#allocation5 + $0x1c0] ss:$20 sps:$4 sm:$0xff]  }
  0x46   :  { %v2302_v44 = vld [vmem:[#allocation5 + $0x1bc] ss:$20 sps:$4 sm:$0xff]   ;;  %v2308_v49 = vld [vmem:[#allocation5 + $0x1e4] ss:$20 sps:$4 sm:$0xff]   ;;  %v2310_v50 = vld [vmem:[#allocation5 + $0x1ec] ss:$20 sps:$4 sm:$0xff]  }
  0x47   :  { %v2705_v47 = vld [vmem:[#allocation2 + $0x4] ss:$20 sps:$4 sm:$0xff]   ;;  %v2312_v51 = vld [vmem:[#allocation5 + $0x1e0] ss:$20 sps:$4 sm:$0xff]   ;;  %v2325_v60 = vld [vmem:[#allocation5 + $0x238] ss:$20 sps:$4 sm:$0xff]  }
  0x48   :  { %1406 = vmatpush1.bf16.msra.mxu0 %v2264_v18  ;;  %1535 = vmatpush1.bf16.msra.mxu1 %v2265_v19  ;;  %v2313_v52 = vld [vmem:[#allocation5 + $0x1e8] ss:$20 sps:$4 sm:$0xff]   ;;  %v2314_v53 = vld [vmem:[#allocation5 + $0x20c] ss:$20 sps:$4 sm:$0xff]   ;;  %v2319_v56 = vld [vmem:[#allocation5 + $0x210] ss:$20 sps:$4 sm:$0xff]  }
  0x49   :  { %1407 = vmatprep.subr.bf16.mxu0 %v2266_v20  ;;  %1536 = vmatprep.subr.bf16.mxu1 %v2268_v21  ;;  %v2316_v54 = vld [vmem:[#allocation5 + $0x214] ss:$20 sps:$4 sm:$0xff]   ;;  %v2322_v58 = vld [vmem:[#allocation5 + $0x23c] ss:$20 sps:$4 sm:$0xff]   ;;  %v2328_v62 = vld [vmem:[#allocation5 + $0x264] ss:$20 sps:$4 sm:$0xff]  }
  0x4a   :  { %1429 = vmatprep.mubr.bf16.mxu0 %v2705_v47  ;;  %1558 = vmatprep.mubr.bf16.mxu1 %v2705_v47  ;;  %v2318_v55 = vld [vmem:[#allocation5 + $0x208] ss:$20 sps:$4 sm:$0xff]   ;;  %v2324_v59 = vld [vmem:[#allocation5 + $0x230] ss:$20 sps:$4 sm:$0xff]   ;;  %v2330_v63 = vld [vmem:[#allocation5 + $0x258] ss:$20 sps:$4 sm:$0xff]  }
  0x4b   :  { %v2320_v57 = vld [vmem:[#allocation5 + $0x234] ss:$20 sps:$4 sm:$0xff]   ;;  %v2326_v61 = vld [vmem:[#allocation5 + $0x25c] ss:$20 sps:$4 sm:$0xff]   ;;  %v2336_v1 = vld [vmem:[#allocation5 + $0x284] ss:$20 sps:$4 sm:$0xff]  }
  0x4c   :  { %1408 = vmatpush1.bf16.msra.mxu0 %v2270_v22  ;;  %1537 = vmatpush1.bf16.msra.mxu1 %v2271_v23  ;;  %v2331_v0 = vld [vmem:[#allocation5 + $0x260] ss:$20 sps:$4 sm:$0xff]   ;;  %v2337_v4 = vld [vmem:[#allocation5 + $0x288] ss:$20 sps:$4 sm:$0xff]   ;;  %v2709_v5 = vld [vmem:[#allocation2] ss:$20 sps:$4 sm:$0xff]  }
  0x4d   :  { %1409 = vmatprep.subr.bf16.mxu0 %v2272_v24  ;;  %1538 = vmatprep.subr.bf16.mxu1 %v2274_v25  ;;  %v2339_v2 = vld [vmem:[#allocation5 + $0x28c] ss:$20 sps:$4 sm:$0xff]   ;;  %v2346_v7 = vld [vmem:[#allocation5 + $0x2b4] ss:$20 sps:$4 sm:$0xff]   ;;  %v2344_v9 = vld [vmem:[#allocation5 + $0x2b0] ss:$20 sps:$4 sm:$0xff]  }
  0x4e   :  { %v2334_v3 = vld [vmem:[#allocation5 + $0x280] ss:$20 sps:$4 sm:$0xff]   ;;  %v2341_v8 = vld [vmem:[#allocation5 + $0x2a8] ss:$20 sps:$4 sm:$0xff]   ;;  %v2347_v12 = vld [vmem:[#allocation5 + $0x2d0] ss:$20 sps:$4 sm:$0xff]  }
  0x4f   :  { %v2343_v6 = vld [vmem:[#allocation5 + $0x2ac] ss:$20 sps:$4 sm:$0xff]   ;;  %v2349_v10 = vld [vmem:[#allocation5 + $0x2d4] ss:$20 sps:$4 sm:$0xff]   ;;  %v2352_v11 = vld [vmem:[#allocation5 + $0x2dc] ss:$20 sps:$4 sm:$0xff]  }
  0x50   :  { %1410 = vmatpush1.bf16.msra.mxu0 %v2276_v26  ;;  %1539 = vmatpush1.bf16.msra.mxu1 %v2277_v27  ;;  %v2350_v13 = vld [vmem:[#allocation5 + $0x2d8] ss:$20 sps:$4 sm:$0xff]   ;;  %v2355_v14 = vld [vmem:[#allocation5 + $0x2fc] ss:$20 sps:$4 sm:$0xff]   ;;  %v2356_v17 = vld [vmem:[#allocation5 + $0x300] ss:$20 sps:$4 sm:$0xff]  }
  0x51   :  { %1411 = vmatprep.subr.bf16.mxu0 %v2278_v28  ;;  %1540 = vmatprep.subr.bf16.mxu1 %v2280_v29  ;;  %v2358_v15 = vld [vmem:[#allocation5 + $0x304] ss:$20 sps:$4 sm:$0xff]   ;;  %v2364_v19 = vld [vmem:[#allocation5 + $0x32c] ss:$20 sps:$4 sm:$0xff]   ;;  %v2362_v21 = vld [vmem:[#allocation5 + $0x328] ss:$20 sps:$4 sm:$0xff]  }
  0x52   :  { %v2353_v16 = vld [vmem:[#allocation5 + $0x2f8] ss:$20 sps:$4 sm:$0xff]   ;;  %v2359_v20 = vld [vmem:[#allocation5 + $0x320] ss:$20 sps:$4 sm:$0xff]   ;;  %v2365_v24 = vld [vmem:[#allocation5 + $0x348] ss:$20 sps:$4 sm:$0xff]  }
  0x53   :  { %v2361_v18 = vld [vmem:[#allocation5 + $0x324] ss:$20 sps:$4 sm:$0xff]   ;;  %v2367_v22 = vld [vmem:[#allocation5 + $0x34c] ss:$20 sps:$4 sm:$0xff]   ;;  %v2370_v23 = vld [vmem:[#allocation5 + $0x354] ss:$20 sps:$4 sm:$0xff]  }
  0x54   :  { %1412 = vmatpush1.bf16.msra.mxu0 %v2282_v30  ;;  %1541 = vmatpush1.bf16.msra.mxu1 %v2283_v31  ;;  %v2368_v25 = vld [vmem:[#allocation5 + $0x350] ss:$20 sps:$4 sm:$0xff]   ;;  %v2373_v26 = vld [vmem:[#allocation5 + $0x374] ss:$20 sps:$4 sm:$0xff]   ;;  %v2374_v29 = vld [vmem:[#allocation5 + $0x378] ss:$20 sps:$4 sm:$0xff]  }
  0x55   :  { %1413 = vmatprep.subr.bf16.mxu0 %v2284_v32  ;;  %1542 = vmatprep.subr.bf16.mxu1 %v2286_v33  ;;  %v2376_v27 = vld [vmem:[#allocation5 + $0x37c] ss:$20 sps:$4 sm:$0xff]   ;;  %v2713_v30 = vld [vmem:[#allocation2 + $0xc] ss:$20 sps:$4 sm:$0xff]   ;;  %vm2634_vm0 = vmmov 0   ;;  %vm1863_vm1 = vcmask 1040384  }
  0x56   :  { %v2371_v28 = vld [vmem:[#allocation5 + $0x370] ss:$20 sps:$4 sm:$0xff]   ;;  %v2377_v33 = vld [vmem:[#allocation5 + $0x398] ss:$20 sps:$4 sm:$0xff]  }
  0x57   :  { %v2379_v31 = vld [vmem:[#allocation5 + $0x39c] ss:$20 sps:$4 sm:$0xff]   ;;  %v2382_v32 = vld [vmem:[#allocation5 + $0x3a4] ss:$20 sps:$4 sm:$0xff]  }
  0x58   :  { %1414 = vmatpush1.bf16.msra.mxu0 %v2288_v34  ;;  %1543 = vmatpush1.bf16.msra.mxu1 %v2289_v35  ;;  %v2380_v34 = vld [vmem:[#allocation5 + $0x3a0] ss:$20 sps:$4 sm:$0xff]   ;;  %v2385_v35 = vld [vmem:[#allocation5 + $0x3c4] ss:$20 sps:$4 sm:$0xff]  }
  0x59   :  { %1415 = vmatprep.subr.bf16.mxu0 %v2290_v36  ;;  %1544 = vmatprep.subr.bf16.mxu1 %v2292_v37  ;;  %v2388_v36 = vld [vmem:[#allocation5 + $0x3cc] ss:$20 sps:$4 sm:$0xff]  }
  0x5a   :  { %v2383_v37 = vld [vmem:[#allocation5 + $0x3c0] ss:$20 sps:$4 sm:$0xff]  }
  0x5c   :  { %1416 = vmatpush1.bf16.msra.mxu0 %v2294_v38  ;;  %1545 = vmatpush1.bf16.msra.mxu1 %v2295_v39  ;;  %v2386_v38 = vld [vmem:[#allocation5 + $0x3c8] ss:$20 sps:$4 sm:$0xff]   ;;  %v2391_v39 = vld [vmem:[#allocation5 + $0x3ec] ss:$20 sps:$4 sm:$0xff]  }
  0x5d   :  { %1417 = vmatprep.subr.bf16.mxu0 %v2296_v40  ;;  %1546 = vmatprep.subr.bf16.mxu1 %v2298_v41  ;;  %v2394_v40 = vld [vmem:[#allocation5 + $0x3f4] ss:$20 sps:$4 sm:$0xff]  }
  0x5e   :  { %v2389_v41 = vld [vmem:[#allocation5 + $0x3e8] ss:$20 sps:$4 sm:$0xff]  }
  0x60   :  { %1418 = vmatpush1.bf16.msra.mxu0 %v2300_v42  ;;  %1547 = vmatpush1.bf16.msra.mxu1 %v2301_v43  ;;  %v2392_v42 = vld [vmem:[#allocation5 + $0x3f0] ss:$20 sps:$4 sm:$0xff]   ;;  %v2397_v43 = vld [vmem:[#allocation5 + $0x414] ss:$20 sps:$4 sm:$0xff]  }
  0x61   :  { %1419 = vmatprep.subr.bf16.mxu0 %v2302_v44  ;;  %1548 = vmatprep.subr.bf16.mxu1 %v2304_v45  ;;  %v2400_v44 = vld [vmem:[#allocation5 + $0x41c] ss:$20 sps:$4 sm:$0xff]  }
  0x62   :  { %v2395_v45 = vld [vmem:[#allocation5 + $0x410] ss:$20 sps:$4 sm:$0xff]  }
  0x64   :  { %1420 = vmatpush1.bf16.msra.mxu0 %v2306_v46  ;;  %1549 = vmatpush1.bf16.msra.mxu1 %v2307_v48  ;;  %v2398_v46 = vld [vmem:[#allocation5 + $0x418] ss:$20 sps:$4 sm:$0xff]   ;;  %v2403_v48 = vld [vmem:[#allocation5 + $0x43c] ss:$20 sps:$4 sm:$0xff]  }
  0x65   :  { %1421 = vmatprep.subr.bf16.mxu0 %v2308_v49  ;;  %1550 = vmatprep.subr.bf16.mxu1 %v2310_v50  ;;  %v2406_v49 = vld [vmem:[#allocation5 + $0x444] ss:$20 sps:$4 sm:$0xff]  }
  0x66   :  { %v2401_v50 = vld [vmem:[#allocation5 + $0x438] ss:$20 sps:$4 sm:$0xff]  }
  0x68   :  { %1422 = vmatpush1.bf16.msra.mxu0 %v2312_v51  ;;  %1551 = vmatpush1.bf16.msra.mxu1 %v2313_v52  ;;  %v2404_v51 = vld [vmem:[#allocation5 + $0x440] ss:$20 sps:$4 sm:$0xff]   ;;  %v2409_v52 = vld [vmem:[#allocation5 + $0x464] ss:$20 sps:$4 sm:$0xff]  }
  0x69   :  { %1423 = vmatprep.subr.bf16.mxu0 %v2314_v53  ;;  %1552 = vmatprep.subr.bf16.mxu1 %v2316_v54  ;;  %v2412_v53 = vld [vmem:[#allocation5 + $0x46c] ss:$20 sps:$4 sm:$0xff]  }
  0x6a   :  { %v2407_v54 = vld [vmem:[#allocation5 + $0x460] ss:$20 sps:$4 sm:$0xff]  }
  0x6c   :  { %1424 = vmatpush1.bf16.msra.mxu0 %v2318_v55  ;;  %1553 = vmatpush1.bf16.msra.mxu1 %v2319_v56  ;;  %v2410_v55 = vld [vmem:[#allocation5 + $0x468] ss:$20 sps:$4 sm:$0xff]   ;;  %v2415_v56 = vld [vmem:[#allocation5 + $0x48c] ss:$20 sps:$4 sm:$0xff]  }
  0x6d   :  { %1425 = vmatprep.subr.bf16.mxu0 %v2320_v57  ;;  %1554 = vmatprep.subr.bf16.mxu1 %v2322_v58  ;;  %v2418_v57 = vld [vmem:[#allocation5 + $0x494] ss:$20 sps:$4 sm:$0xff]  }
  0x6e   :  { %v2413_v58 = vld [vmem:[#allocation5 + $0x488] ss:$20 sps:$4 sm:$0xff]  }
  0x70   :  { %1426 = vmatpush1.bf16.msra.mxu0 %v2324_v59  ;;  %1555 = vmatpush1.bf16.msra.mxu1 %v2325_v60  ;;  %v2416_v59 = vld [vmem:[#allocation5 + $0x490] ss:$20 sps:$4 sm:$0xff]   ;;  %v2421_v60 = vld [vmem:[#allocation5 + $0x4b4] ss:$20 sps:$4 sm:$0xff]  }
  0x71   :  { %1427 = vmatprep.subr.bf16.mxu0 %v2326_v61  ;;  %1556 = vmatprep.subr.bf16.mxu1 %v2328_v62  ;;  %v2424_v61 = vld [vmem:[#allocation5 + $0x4bc] ss:$20 sps:$4 sm:$0xff]  }
  0x72   :  { %v2419_v62 = vld [vmem:[#allocation5 + $0x4b0] ss:$20 sps:$4 sm:$0xff]  }
  0x74   :  { %1428 = vmatpush1.bf16.msra.mxu0 %v2330_v63  ;;  %1557 = vmatpush1.bf16.msra.mxu1 %v2331_v0  ;;  %v2422_v63 = vld [vmem:[#allocation5 + $0x4b8] ss:$20 sps:$4 sm:$0xff]   ;;  %v2427_v0 = vld [vmem:[#allocation5 + $0x4dc] ss:$20 sps:$4 sm:$0xff]  }
  0x75   :  { %1440 = vmatprep.subr.bf16.mxu0 %v2336_v1  ;;  %1569 = vmatprep.subr.bf16.mxu1 %v2339_v2  ;;  %v2430_v1 = vld [vmem:[#allocation5 + $0x4e4] ss:$20 sps:$4 sm:$0xff]  }
  0x76   :  { %v2425_v2 = vld [vmem:[#allocation5 + $0x4d8] ss:$20 sps:$4 sm:$0xff]  }
  0x77   :  { %1430 = vmatmul.mubr.bf16.vlgmr.msra.gmra.mrb[0].mxu0 %v2709_v5  ;;  %1559 = vmatmul.mubr.bf16.vlgmr.msra.gmra.mrb[0].mxu1 %v2709_v5 }
  0x78   :  { %1441 = vmatpush1.bf16.msra.mxu0 %v2334_v3  ;;  %1570 = vmatpush1.bf16.msra.mxu1 %v2337_v4  ;;  %v2428_v3 = vld [vmem:[#allocation5 + $0x4e0] ss:$20 sps:$4 sm:$0xff]   ;;  %v2436_v4 = vld [vmem:[#allocation5 + $0x504] ss:$20 sps:$4 sm:$0xff]  }
  0x79   :  { %1442 = vmatprep.subr.bf16.mxu0 %v2343_v6  ;;  %1571 = vmatprep.subr.bf16.mxu1 %v2346_v7  ;;  %v2717_v6 = vld [vmem:[#allocation2 + $0x8] ss:$20 sps:$4 sm:$0xff]  }
  0x7a   :  { %1472 = vmatprep.mubr.bf16.mxu0 %v2713_v30  ;;  %1601 = vmatprep.mubr.bf16.mxu1 %v2713_v30  ;;  %v2439_v7 = vld [vmem:[#allocation5 + $0x50c] ss:$20 sps:$4 sm:$0xff]  }
  0x7c   :  { %1443 = vmatpush1.bf16.msra.mxu0 %v2341_v8  ;;  %1572 = vmatpush1.bf16.msra.mxu1 %v2344_v9  ;;  %v2434_v8 = vld [vmem:[#allocation5 + $0x500] ss:$20 sps:$4 sm:$0xff]   ;;  %v2437_v9 = vld [vmem:[#allocation5 + $0x508] ss:$20 sps:$4 sm:$0xff]  }
  0x7d   :  { %1444 = vmatprep.subr.bf16.mxu0 %v2349_v10  ;;  %1573 = vmatprep.subr.bf16.mxu1 %v2352_v11  ;;  %v2442_v10 = vld [vmem:[#allocation5 + $0x52c] ss:$20 sps:$4 sm:$0xff]   ;;  %v2445_v11 = vld [vmem:[#allocation5 + $0x534] ss:$20 sps:$4 sm:$0xff]  }
  0x80   :  { %1445 = vmatpush1.bf16.msra.mxu0 %v2347_v12  ;;  %1574 = vmatpush1.bf16.msra.mxu1 %v2350_v13  ;;  %v2440_v12 = vld [vmem:[#allocation5 + $0x528] ss:$20 sps:$4 sm:$0xff]   ;;  %v2443_v13 = vld [vmem:[#allocation5 + $0x530] ss:$20 sps:$4 sm:$0xff]  }
  0x81   :  { %1446 = vmatprep.subr.bf16.mxu0 %v2355_v14  ;;  %1575 = vmatprep.subr.bf16.mxu1 %v2358_v15  ;;  %v2448_v14 = vld [vmem:[#allocation5 + $0x554] ss:$20 sps:$4 sm:$0xff]   ;;  %v2451_v15 = vld [vmem:[#allocation5 + $0x55c] ss:$20 sps:$4 sm:$0xff]  }
  0x84   :  { %1447 = vmatpush1.bf16.msra.mxu0 %v2353_v16  ;;  %1576 = vmatpush1.bf16.msra.mxu1 %v2356_v17  ;;  %v2446_v16 = vld [vmem:[#allocation5 + $0x550] ss:$20 sps:$4 sm:$0xff]   ;;  %v2632_v17 = vmov 0  }
  0x85   :  { %1448 = vmatprep.subr.bf16.mxu0 %v2361_v18  ;;  %1577 = vmatprep.subr.bf16.mxu1 %v2364_v19  ;;  %v2449_v18 = vld [vmem:[#allocation5 + $0x558] ss:$20 sps:$4 sm:$0xff]   ;;  %v2454_v19 = vld [vmem:[#allocation5 + $0x57c] ss:$20 sps:$4 sm:$0xff]  }
  0x88   :  { %1449 = vmatpush1.bf16.msra.mxu0 %v2359_v20  ;;  %1578 = vmatpush1.bf16.msra.mxu1 %v2362_v21  ;;  %v2457_v20 = vld [vmem:[#allocation5 + $0x584] ss:$20 sps:$4 sm:$0xff]  }
  0x89   :  { %1450 = vmatprep.subr.bf16.mxu0 %v2367_v22  ;;  %1579 = vmatprep.subr.bf16.mxu1 %v2370_v23  ;;  %v2452_v21 = vld [vmem:[#allocation5 + $0x578] ss:$20 sps:$4 sm:$0xff]   ;;  %v2455_v22 = vld [vmem:[#allocation5 + $0x580] ss:$20 sps:$4 sm:$0xff]  }
  0x8a   :  { %v2460_v23 = vld [vmem:[#allocation5 + $0x5a4] ss:$20 sps:$4 sm:$0xff]  }
  0x8c   :  { %1451 = vmatpush1.bf16.msra.mxu0 %v2365_v24  ;;  %1580 = vmatpush1.bf16.msra.mxu1 %v2368_v25  ;;  %v2463_v24 = vld [vmem:[#allocation5 + $0x5ac] ss:$20 sps:$4 sm:$0xff]  }
  0x8d   :  { %1452 = vmatprep.subr.bf16.mxu0 %v2373_v26  ;;  %1581 = vmatprep.subr.bf16.mxu1 %v2376_v27  ;;  %v2458_v25 = vld [vmem:[#allocation5 + $0x5a0] ss:$20 sps:$4 sm:$0xff]   ;;  %v2461_v26 = vld [vmem:[#allocation5 + $0x5a8] ss:$20 sps:$4 sm:$0xff]  }
  0x8e   :  { %v2466_v27 = vld [vmem:[#allocation5 + $0x5cc] ss:$20 sps:$4 sm:$0xff]  }
  0x90   :  { %1453 = vmatpush1.bf16.msra.mxu0 %v2371_v28  ;;  %1582 = vmatpush1.bf16.msra.mxu1 %v2374_v29  ;;  %v2469_v28 = vld [vmem:[#allocation5 + $0x5d4] ss:$20 sps:$4 sm:$0xff]  }
  0x91   :  { %1454 = vmatprep.subr.bf16.mxu0 %v2379_v31  ;;  %1583 = vmatprep.subr.bf16.mxu1 %v2382_v32  ;;  %v2464_v29 = vld [vmem:[#allocation5 + $0x5c8] ss:$20 sps:$4 sm:$0xff]   ;;  %v2467_v31 = vld [vmem:[#allocation5 + $0x5d0] ss:$20 sps:$4 sm:$0xff]  }
  0x92   :  { %v2472_v32 = vld [vmem:[#allocation5 + $0x5f4] ss:$20 sps:$4 sm:$0xff]  }
  0x94   :  { %1455 = vmatpush1.bf16.msra.mxu0 %v2377_v33  ;;  %1584 = vmatpush1.bf16.msra.mxu1 %v2380_v34  ;;  %v2475_v33 = vld [vmem:[#allocation5 + $0x5fc] ss:$20 sps:$4 sm:$0xff]  }
  0x95   :  { %1456 = vmatprep.subr.bf16.mxu0 %v2385_v35  ;;  %1585 = vmatprep.subr.bf16.mxu1 %v2388_v36  ;;  %v2470_v34 = vld [vmem:[#allocation5 + $0x5f0] ss:$20 sps:$4 sm:$0xff]   ;;  %v2473_v35 = vld [vmem:[#allocation5 + $0x5f8] ss:$20 sps:$4 sm:$0xff]  }
  0x96   :  { %v2478_v36 = vld [vmem:[#allocation5 + $0x61c] ss:$20 sps:$4 sm:$0xff]  }
  0x98   :  { %1457 = vmatpush1.bf16.msra.mxu0 %v2383_v37  ;;  %1586 = vmatpush1.bf16.msra.mxu1 %v2386_v38  ;;  %v2481_v37 = vld [vmem:[#allocation5 + $0x624] ss:$20 sps:$4 sm:$0xff]  }
  0x99   :  { %1458 = vmatprep.subr.bf16.mxu0 %v2391_v39  ;;  %1587 = vmatprep.subr.bf16.mxu1 %v2394_v40  ;;  %v2476_v38 = vld [vmem:[#allocation5 + $0x618] ss:$20 sps:$4 sm:$0xff]   ;;  %v2479_v39 = vld [vmem:[#allocation5 + $0x620] ss:$20 sps:$4 sm:$0xff]   ;;  %v2483_v40 = vld [vmem:[#allocation5 + $0x150] ss:$20 sps:$4 sm:$0xff]  }
  0x9c   :  { %1459 = vmatpush1.bf16.msra.mxu0 %v2389_v41  ;;  %1588 = vmatpush1.bf16.msra.mxu1 %v2392_v42  ;;  %v2485_v41 = vld [vmem:[#allocation5 + $0x3d0] ss:$20 sps:$4 sm:$0xff]   ;;  %v2721_v42 = vld [vmem:[#allocation2 + $0x10] ss:$20 sps:$4 sm:$0xff]  }
  0x9d   :  { %1460 = vmatprep.subr.bf16.mxu0 %v2397_v43  ;;  %1589 = vmatprep.subr.bf16.mxu1 %v2400_v44  ;;  %v2484_v43 = vld [vmem:[#allocation5 + $0x10] ss:$20 sps:$4 sm:$0xff]  }
  0x9e   :  { %v2486_v44 = vld [vmem:[#allocation5 + $0x290] ss:$20 sps:$4 sm:$0xff]  }
  0xa0   :  { %1461 = vmatpush1.bf16.msra.mxu0 %v2395_v45  ;;  %1590 = vmatpush1.bf16.msra.mxu1 %v2398_v46  ;;  %v2487_v45 = vld [vmem:[#allocation5 + $0x178] ss:$20 sps:$4 sm:$0xff]  }
  0xa1   :  { %1462 = vmatprep.subr.bf16.mxu0 %v2403_v48  ;;  %1591 = vmatprep.subr.bf16.mxu1 %v2406_v49  ;;  %v2489_v46 = vld [vmem:[#allocation5 + $0x3f8] ss:$20 sps:$4 sm:$0xff]  }
  0xa2   :  { %v2488_v48 = vld [vmem:[#allocation5 + $0x38] ss:$20 sps:$4 sm:$0xff]  }
  0xa3   :  { %v2490_v49 = vld [vmem:[#allocation5 + $0x2b8] ss:$20 sps:$4 sm:$0xff]  }
  0xa4   :  { %1463 = vmatpush1.bf16.msra.mxu0 %v2401_v50  ;;  %1592 = vmatpush1.bf16.msra.mxu1 %v2404_v51  ;;  %v2491_v50 = vld [vmem:[#allocation5 + $0x1a0] ss:$20 sps:$4 sm:$0xff]  }
  0xa5   :  { %1464 = vmatprep.subr.bf16.mxu0 %v2409_v52  ;;  %1593 = vmatprep.subr.bf16.mxu1 %v2412_v53  ;;  %v2493_v51 = vld [vmem:[#allocation5 + $0x420] ss:$20 sps:$4 sm:$0xff]  }
  0xa6   :  { %v2492_v52 = vld [vmem:[#allocation5 + $0x60] ss:$20 sps:$4 sm:$0xff]  }
  0xa7   :  { %v2494_v53 = vld [vmem:[#allocation5 + $0x2e0] ss:$20 sps:$4 sm:$0xff]  }
  0xa8   :  { %1465 = vmatpush1.bf16.msra.mxu0 %v2407_v54  ;;  %1594 = vmatpush1.bf16.msra.mxu1 %v2410_v55  ;;  %v2495_v54 = vld [vmem:[#allocation5 + $0x1c8] ss:$20 sps:$4 sm:$0xff]  }
  0xa9   :  { %1466 = vmatprep.subr.bf16.mxu0 %v2415_v56  ;;  %1595 = vmatprep.subr.bf16.mxu1 %v2418_v57  ;;  %v2497_v55 = vld [vmem:[#allocation5 + $0x448] ss:$20 sps:$4 sm:$0xff]  }
  0xaa   :  { %v2496_v56 = vld [vmem:[#allocation5 + $0x88] ss:$20 sps:$4 sm:$0xff]  }
  0xab   :  { %v2498_v57 = vld [vmem:[#allocation5 + $0x308] ss:$20 sps:$4 sm:$0xff]  }
  0xac   :  { %1467 = vmatpush1.bf16.msra.mxu0 %v2413_v58  ;;  %1596 = vmatpush1.bf16.msra.mxu1 %v2416_v59  ;;  %v2499_v58 = vld [vmem:[#allocation5 + $0x1f0] ss:$20 sps:$4 sm:$0xff]  }
  0xad   :  { %1468 = vmatprep.subr.bf16.mxu0 %v2421_v60  ;;  %1597 = vmatprep.subr.bf16.mxu1 %v2424_v61  ;;  %v2501_v59 = vld [vmem:[#allocation5 + $0x470] ss:$20 sps:$4 sm:$0xff]   ;;  %v2503_v60 = vld [vmem:[#allocation5 + $0x218] ss:$20 sps:$4 sm:$0xff]  }
  0xae   :  { %v2505_v61 = vld [vmem:[#allocation5 + $0x498] ss:$20 sps:$4 sm:$0xff]  }
  0xb0   :  { %1469 = vmatpush1.bf16.msra.mxu0 %v2419_v62  ;;  %1598 = vmatpush1.bf16.msra.mxu1 %v2422_v63  ;;  %v2504_v62 = vld [vmem:[#allocation5 + $0xd8] ss:$20 sps:$4 sm:$0xff]  }
  0xb1   :  { %1470 = vmatprep.subr.bf16.mxu0 %v2427_v0  ;;  %1599 = vmatprep.subr.bf16.mxu1 %v2430_v1  ;;  %v2506_v63 = vld [vmem:[#allocation5 + $0x358] ss:$20 sps:$4 sm:$0xff]   ;;  %v2507_v0 = vld [vmem:[#allocation5 + $0x240] ss:$20 sps:$4 sm:$0xff]  }
  0xb2   :  { %v2509_v1 = vld [vmem:[#allocation5 + $0x4c0] ss:$20 sps:$4 sm:$0xff]  }
  0xb4   :  { %1471 = vmatpush1.bf16.msra.mxu0 %v2425_v2  ;;  %1600 = vmatpush1.bf16.msra.mxu1 %v2428_v3  ;;  %v2508_v2 = vld [vmem:[#allocation5 + $0x100] ss:$20 sps:$4 sm:$0xff]  }
  0xb5   :  { %1483 = vmatprep.subr.bf16.mxu0 %v2436_v4  ;;  %1612 = vmatprep.subr.bf16.mxu1 %v2439_v7  ;;  %v2510_v3 = vld [vmem:[#allocation5 + $0x380] ss:$20 sps:$4 sm:$0xff]   ;;  %v2511_v4 = vld [vmem:[#allocation5 + $0x268] ss:$20 sps:$4 sm:$0xff]  }
  0xb6   :  { %v2513_v7 = vld [vmem:[#allocation5 + $0x4e8] ss:$20 sps:$4 sm:$0xff]  }
  0xb7   :  { %1473 = vmatmul.mubr.bf16.vlgmr.msra.gmra.mrb[0].mxu0 %v2717_v6  ;;  %1602 = vmatmul.mubr.bf16.vlgmr.msra.gmra.mrb[0].mxu1 %v2717_v6 }
  0xb8   :  { %1484 = vmatpush1.bf16.msra.mxu0 %v2434_v8  ;;  %1613 = vmatpush1.bf16.msra.mxu1 %v2437_v9  ;;  %v2512_v8 = vld [vmem:[#allocation5 + $0x128] ss:$20 sps:$4 sm:$0xff]  }
  0xb9   :  { %1485 = vmatprep.subr.bf16.mxu0 %v2442_v10  ;;  %1614 = vmatprep.subr.bf16.mxu1 %v2445_v11  ;;  %v2514_v9 = vld [vmem:[#allocation5 + $0x3a8] ss:$20 sps:$4 sm:$0xff]   ;;  %v2515_v10 = vld [vmem:[#allocation5 + $0x510] ss:$20 sps:$4 sm:$0xff]   ;;  %v2633_v11 = vmov 0.0  }
  0xba   :  { %1515 = vmatprep.mubr.bf16.mxu0 %v2632_v17  ;;  %1644 = vmatprep.mubr.bf16.mxu1 %v2632_v17  ;;  %v306_v17 = vlaneseq }
  0xbc   :  { %1486 = vmatpush1.bf16.msra.mxu0 %v2440_v12  ;;  %1615 = vmatpush1.bf16.msra.mxu1 %v2443_v13  ;;  %v2516_v12 = vld [vmem:[#allocation5 + $0x538] ss:$20 sps:$4 sm:$0xff]   ;;  %v2517_v13 = vld [vmem:[#allocation5 + $0x560] ss:$20 sps:$4 sm:$0xff]  }
  0xbd   :  { %1487 = vmatprep.subr.bf16.mxu0 %v2448_v14  ;;  %1616 = vmatprep.subr.bf16.mxu1 %v2451_v15  ;;  %v2518_v14 = vld [vmem:[#allocation5 + $0x588] ss:$20 sps:$4 sm:$0xff]   ;;  %v2519_v15 = vld [vmem:[#allocation5 + $0x5b0] ss:$20 sps:$4 sm:$0xff]  }
  0xc0   :  { %1488 = vmatpush1.bf16.msra.mxu0 %v2446_v16  ;;  %1617 = vmatpush1.bf16.msra.mxu1 %v2449_v18  ;;  %v2520_v16 = vld [vmem:[#allocation5 + $0x5d8] ss:$20 sps:$4 sm:$0xff]   ;;  %v2730_v18 = vshrl.u32 %v306_v17, 7 }
  0xc1   :  { %1489 = vmatprep.subr.bf16.mxu0 %v2454_v19  ;;  %1618 = vmatprep.subr.bf16.mxu1 %v2457_v20 }
  0xc2   :  { %v308_v19 = vsub.s32 0, %v2730_v18  ;;  %v316_v20 = vsub.s32 2, %v2730_v18 }
  0xc4   :  { %1490 = vmatpush1.bf16.msra.mxu0 %v2452_v21  ;;  %1619 = vmatpush1.bf16.msra.mxu1 %v2455_v22  ;;  %v2737_v21 = vld [vmem:[%s2767_s2] sm:$0x1f]  ;;  %v312_v22 = vsub.s32 1, %v2730_v18  ;;  %s2636_s2 = smov [#allocation8]  }
  0xc5   :  { %1491 = vmatprep.subr.bf16.mxu0 %v2460_v23  ;;  %1620 = vmatprep.subr.bf16.mxu1 %v2463_v24  ;;  %v320_v23 = vsub.s32 3, %v2730_v18  ;;  %v309_v24 = vrot.slane %v2737_v21, %v308_v19  ;;  %s1913_s26 = sshll.u32 %s2636_s2, 4  ;;  %s1914_s26 = int_to_ptr.vmem [resolvable:$true] %s1913_s26 }
  0xc6   :  { %s2599_s27 = scalar_lea.vmem %s1914_s26, 160  ;;  %p2604_p11 = scmp.lt.s32.totalorder %s1914_s26, %s1914_s26 }
  0xc7   :  { %p2600_p10 = scmp.ne.s32.totalorder %s1914_s26, %s2599_s27  ;;  %p2605_p12 = scmp.lt.s32.totalorder %s2599_s27, %s2599_s27 }
  0xc8   :  { %1492 = vmatpush1.bf16.msra.mxu0 %v2458_v25  ;;  %1621 = vmatpush1.bf16.msra.mxu1 %v2461_v26  ;;  %v317_v25 = vrot.slane %v2737_v21, %v316_v20  ;;  %v313_v26 = vrot.slane %v2737_v21, %v312_v22 }
  0xc9   :  { %1493 = vmatprep.subr.bf16.mxu0 %v2466_v27  ;;  %1622 = vmatprep.subr.bf16.mxu1 %v2469_v28  ;;  %v321_v27 = vrot.slane %v2737_v21, %v320_v23  ;;  %p2606_p13 = por %p2605_p12, %p2604_p11 }
  0xcb   :  { %p2607_p0 = pnand %p2606_p13, %p2600_p10 }
  0xcc   :  { %1494 = vmatpush1.bf16.msra.mxu0 %v2464_v29  ;;  %1623 = vmatpush1.bf16.msra.mxu1 %v2467_v31 }
  0xcd   :  { %1495 = vmatprep.subr.bf16.mxu0 %v2472_v32  ;;  %1624 = vmatprep.subr.bf16.mxu1 %v2475_v33 }
  0xd0   :  { %1496 = vmatpush1.bf16.msra.mxu0 %v2470_v34  ;;  %1625 = vmatpush1.bf16.msra.mxu1 %v2473_v35  ;;  %v1788_v35 = vld [vmem:[#allocation7] sm:$0xff] }
  0xd1   :  { %1497 = vmatprep.subr.bf16.mxu0 %v2478_v36  ;;  %1626 = vmatprep.subr.bf16.mxu1 %v2481_v37  ;;  %v1790_v36 = vld [vmem:[#allocation7 + $0x10] sm:$0xff] }
  0xd4   :  { %1498 = vmatpush1.bf16.msra.mxu0 %v2476_v38  ;;  %1627 = vmatpush1.bf16.msra.mxu1 %v2479_v39 }
  0xd5   :  { %2129 = vmatprep.subr.bf16.mxu0 %v2483_v40  ;;  %2151 = vmatprep.subr.bf16.mxu1 %v2485_v41 }
  0xd7   :  { %1516 = vmatmul.mubr.bf16.vlgmr.msra.gmra.mrb[0].mxu0 %v2721_v42  ;;  %1645 = vmatmul.mubr.bf16.vlgmr.msra.gmra.mrb[0].mxu1 %v2721_v42 }
  0xd8   :  { %2130 = vmatpush3.bf16.msra.mxu0 %v2484_v43  ;;  %2152 = vmatpush3.bf16.msra.mxu1 %v2486_v44  ;;  %v1789_v43 = vld [vmem:[#allocation7 + $0x8] sm:$0xff]  ;;  %v1791_v44 = vld [vmem:[#allocation7 + $0x18] sm:$0xff] }
  0xd9   :  { %2131 = vmatprep.subr.bf16.mxu0 %v2487_v45  ;;  %2153 = vmatprep.subr.bf16.mxu1 %v2489_v46 }
  0xda   :  { %1687 = vmatprep.mubr.bf16.mxu0 %v2705_v47  ;;  %1728 = vmatprep.mubr.bf16.mxu1 %v2713_v30  ;;  %v2500_v47 = vld [vmem:[#allocation5 + $0xb0] ss:$20 sps:$4 sm:$0xff]  }
  0xdb   :  { %v2502_v30 = vld [vmem:[#allocation5 + $0x330] ss:$20 sps:$4 sm:$0xff]  }
  0xdc   :  { %2132 = vmatpush3.bf16.msra.mxu0 %v2488_v48  ;;  %2154 = vmatpush3.bf16.msra.mxu1 %v2490_v49 }
  0xdd   :  { %2133 = vmatprep.subr.bf16.mxu0 %v2491_v50  ;;  %2155 = vmatprep.subr.bf16.mxu1 %v2493_v51 }
  0xe0   :  { %2134 = vmatpush3.bf16.msra.mxu0 %v2492_v52  ;;  %2156 = vmatpush3.bf16.msra.mxu1 %v2494_v53 }
  0xe1   :  { %2135 = vmatprep.subr.bf16.mxu0 %v2495_v54  ;;  %2157 = vmatprep.subr.bf16.mxu1 %v2497_v55 }
  0xe4   :  { %2136 = vmatpush3.bf16.msra.mxu0 %v2496_v56  ;;  %2158 = vmatpush3.bf16.msra.mxu1 %v2498_v57 }
  0xe5   :  { %2137 = vmatprep.subr.bf16.mxu0 %v2499_v58  ;;  %2159 = vmatprep.subr.bf16.mxu1 %v2501_v59 }
  0xe8   :  { %2138 = vmatpush3.bf16.msra.mxu0 %v2500_v47  ;;  %2160 = vmatpush3.bf16.msra.mxu1 %v2502_v30 }
  0xe9   :  { %2139 = vmatprep.subr.bf16.mxu0 %v2503_v60  ;;  %2161 = vmatprep.subr.bf16.mxu1 %v2505_v61 }
  0xec   :  { %2140 = vmatpush3.bf16.msra.mxu0 %v2504_v62  ;;  %2162 = vmatpush3.bf16.msra.mxu1 %v2506_v63 }
  0xed   :  { %2141 = vmatprep.subr.bf16.mxu0 %v2507_v0  ;;  %2163 = vmatprep.subr.bf16.mxu1 %v2509_v1 }
  0xf0   :  { %2142 = vmatpush3.bf16.msra.mxu0 %v2508_v2  ;;  %2164 = vmatpush3.bf16.msra.mxu1 %v2510_v3 }
  0xf1   :  { %2143 = vmatprep.subr.bf16.mxu0 %v2511_v4  ;;  %2165 = vmatprep.subr.bf16.mxu1 %v2513_v7 }
  0xf4   :  { %2144 = vmatpush3.bf16.msra.mxu0 %v2512_v8  ;;  %2166 = vmatpush3.bf16.msra.mxu1 %v2514_v9 }
  0xf5   :  { %2182 = vmatprep.subr.bf16.mxu0 %v2633_v11 }
  0xf7   :  { %1688 = vmatmul.mubr.bf16.vlgmr.msra.gmra.mrb[4].mxu0 %v2709_v5  ;;  %1729 = vmatmul.mubr.bf16.vlgmr.msra.gmra.mrb[4].mxu1 %v2717_v6  ;;  %v2521_v5 = vld [vmem:[#allocation5 + $0x600] ss:$20 sps:$4 sm:$0xff]   ;;  %v2522_v6 = vld [vmem:[#allocation5 + $0x628] ss:$20 sps:$4 sm:$0xff]  }
  0xf8   :  { %2183 = vmatpush3.bf16.msra.mxu0 %v2515_v10  ;;  %2198 = vmatprep.mubr.msk.bf16.mxu0 %vm2634_vm0, %v2633_v11 }
  0xf9   :  { %2184 = vmatprep.subr.bf16.mxu0 %v2633_v11 }
  0xfc   :  { %2185 = vmatpush3.bf16.msra.mxu0 %v2516_v12 }
  0xfd   :  { %2186 = vmatprep.subr.bf16.mxu0 %v2633_v11 }
 0x100   :  { %2187 = vmatpush3.bf16.msra.mxu0 %v2517_v13 }
 0x101   :  { %2188 = vmatprep.subr.bf16.mxu0 %v2633_v11 }
 0x104   :  { %2189 = vmatpush3.bf16.msra.mxu0 %v2518_v14 }
 0x105   :  { %2190 = vmatprep.subr.bf16.mxu0 %v2633_v11 }
 0x108   :  { %2191 = vmatpush3.bf16.msra.mxu0 %v2519_v15 }
 0x109   :  { %2192 = vmatprep.subr.bf16.mxu0 %v2633_v11 }
 0x10c   :  { %2193 = vmatpush3.bf16.msra.mxu0 %v2520_v16 }
 0x10d   :  { %2194 = vmatprep.subr.bf16.mxu0 %v2633_v11 }
 0x110   :  { %2195 = vmatpush3.bf16.msra.mxu0 %v2521_v5 }
 0x111   :  { %2196 = vmatprep.subr.bf16.mxu0 %v2633_v11 }
 0x114   :  { %2197 = vmatpush3.bf16.msra.mxu0 %v2522_v6 }
 0x117   :  { %2199 = vmatmul.mubr.bf16.vlgmr.msra.gmra.mrb[8].mxu0 %v2721_v42 }
 0x1aa   :  { %v1517_v28 = vpop.f32.mrb[0].mxu0  ;;  %v1646_v29 = vpop.f32.mrb[0].mxu1 }
 0x1ab   :  { %v2202_v31 = vadd.f32 %v1517_v28, %v309_v24  ;;  %v2206_v32 = vadd.f32 %v1646_v29, %v317_v25  ;;  %v1519_v33 = vpop.f32.mrb[1].mxu0  ;;  %v1648_v34 = vpop.f32.mrb[1].mxu1 }
 0x1ac   :  { %v2203_v37 = vadd.f32 %v1519_v33, %v313_v26  ;;  %v2207_v38 = vadd.f32 %v1648_v34, %v321_v27  ;;  %v1521_v39 = vpop.f32.mrb[2].mxu0  ;;  %v1650_v40 = vpop.f32.mrb[2].mxu1 }
 0x1ad   :  { %v1778_v41 = vmax.f32 %v2202_v31, 0.0  ;;  %v1780_v42 = vmax.f32 %v2206_v32, 0.0  ;;  %v2204_v45 = vadd.f32 %v1521_v39, %v309_v24  ;;  %v2208_v46 = vadd.f32 %v1650_v40, %v317_v25  ;;  %v1523_v48 = vpop.f32.mrb[3].mxu0  ;;  %v1652_v49 = vpop.f32.mrb[3].mxu1 }
 0x1ae   :  { %v1779_v50 = vmax.f32 %v2203_v37, 0.0  ;;  %v1781_v51 = vmax.f32 %v2207_v38, 0.0  ;;  %v2205_v52 = vadd.f32 %v1523_v48, %v313_v26  ;;  %v2209_v53 = vadd.f32 %v1652_v49, %v321_v27 }
 0x1af   :  { %v1793_v54 = vadd.f32 %v1788_v35, %v1778_v41  ;;  %v1795_v55 = vadd.f32 %v1790_v36, %v1780_v42  ;;  %v1783_v56 = vmax.f32 %v2204_v45, 0.0  ;;  %v1785_v57 = vmax.f32 %v2208_v46, 0.0 }
 0x1b0   :  { %v1794_v58 = vadd.f32 %v1789_v43, %v1779_v50  ;;  %v1796_v59 = vadd.f32 %v1791_v44, %v1781_v51  ;;  %v1784_v47 = vmax.f32 %v2205_v52, 0.0  ;;  %v1786_v30 = vmax.f32 %v2209_v53, 0.0 }
 0x1b1   :  { %v1798_v60 = vrot.slane %v1793_v54, 4  ;;  %v1810_v61 = vrot.slane %v1795_v55, 4  ;;  %v1828_v62 = vadd.f32 %v1788_v35, %v1783_v56  ;;  %v1830_v63 = vadd.f32 %v1790_v36, %v1785_v57 }
 0x1b2   :  { %v1804_v0 = vrot.slane %v1794_v58, 4  ;;  %v1816_v1 = vrot.slane %v1796_v59, 4  ;;  %v1829_v2 = vadd.f32 %v1789_v43, %v1784_v47  ;;  %v1831_v3 = vadd.f32 %v1791_v44, %v1786_v30 }
 0x1b3   :  { %v1799_v4 = vmax.f32 %v1793_v54, %v1798_v60  ;;  %v1811_v7 = vmax.f32 %v1795_v55, %v1810_v61  ;;  %v1833_v8 = vrot.slane %v1828_v62, 4  ;;  %v1845_v9 = vrot.slane %v1830_v63, 4 }
 0x1b4   :  { %v1805_v10 = vmax.f32 %v1794_v58, %v1804_v0  ;;  %v1817_v11 = vmax.f32 %v1796_v59, %v1816_v1  ;;  %v1839_v12 = vrot.slane %v1829_v2, 4  ;;  %v1851_v13 = vrot.slane %v1831_v3, 4 }
 0x1b5   :  { %v1800_v14 = vrot.slane %v1799_v4, 2  ;;  %v1812_v15 = vrot.slane %v1811_v7, 2  ;;  %v1834_v16 = vmax.f32 %v1828_v62, %v1833_v8  ;;  %v1846_v5 = vmax.f32 %v1830_v63, %v1845_v9 }
 0x1b6   :  { %v1806_v6 = vrot.slane %v1805_v10, 2  ;;  %v1818_v17 = vrot.slane %v1817_v11, 2  ;;  %v1840_v19 = vmax.f32 %v1829_v2, %v1839_v12  ;;  %v1852_v20 = vmax.f32 %v1831_v3, %v1851_v13 }
 0x1b7   :  { %v1801_v22 = vmax.f32 %v1799_v4, %v1800_v14  ;;  %v1813_v23 = vmax.f32 %v1811_v7, %v1812_v15  ;;  %v1835_v24 = vrot.slane %v1834_v16, 2  ;;  %v1847_v25 = vrot.slane %v1846_v5, 2 }
 0x1b8   :  { %v1807_v26 = vmax.f32 %v1805_v10, %v1806_v6  ;;  %v1819_v27 = vmax.f32 %v1817_v11, %v1818_v17  ;;  %v1841_v28 = vrot.slane %v1840_v19, 2  ;;  %v1853_v29 = vrot.slane %v1852_v20, 2 }
 0x1b9   :  { %v1802_v31 = vrot.slane %v1801_v22, 1  ;;  %v1814_v32 = vrot.slane %v1813_v23, 1  ;;  %v1836_v33 = vmax.f32 %v1834_v16, %v1835_v24  ;;  %v1848_v34 = vmax.f32 %v1846_v5, %v1847_v25  ;;  %v1792_v24 = vld [vmem:[#allocation7 + $0x20] sm:$0xff] }
 0x1ba   :  { %v1808_v35 = vrot.slane %v1807_v26, 1  ;;  %v1820_v36 = vrot.slane %v1819_v27, 1  ;;  %v1842_v37 = vmax.f32 %v1840_v19, %v1841_v28  ;;  %v1854_v38 = vmax.f32 %v1852_v20, %v1853_v29 }
 0x1bb   :  { %v1837_v39 = vrot.slane %v1836_v33, 1  ;;  %v1849_v40 = vrot.slane %v1848_v34, 1  ;;  %v1803_v43 = vmax.f32 %v1801_v22, %v1802_v31  ;;  %v1815_v44 = vmax.f32 %v1813_v23, %v1814_v32 }
 0x1bc   :  { %v1843_v41 = vrot.slane %v1842_v37, 1  ;;  %v1855_v42 = vrot.slane %v1854_v38, 1  ;;  %v1809_v48 = vmax.f32 %v1807_v26, %v1808_v35  ;;  %v1821_v49 = vmax.f32 %v1819_v27, %v1820_v36 }
 0x1bd   :  { %v1838_v45 = vmax.f32 %v1836_v33, %v1837_v39  ;;  %v1850_v46 = vmax.f32 %v1848_v34, %v1849_v40  ;;  %v2635_v56 = vmov 1983009808   ;;  %v324_v58 = vsub.s32 4, %v2730_v18 }
 0x1be   :  { %v1844_v50 = vmax.f32 %v1842_v37, %v1843_v41  ;;  %v1856_v51 = vmax.f32 %v1854_v38, %v1855_v42  ;;  %v1882_v57 = vunpack.c.l.s4 %v2635_v56 }
 0x1bf   :  { %v1864_v52 = vsel %vm1863_vm1, %v1803_v43, %v1838_v45  ;;  %v1866_v53 = vsel %vm1863_vm1, %v1815_v44, %v1850_v46  ;;  %v325_v60 = vrot.slane %v2737_v21, %v324_v58 }
 0x1c0   :  { %2523 = vtanh.f32 %v1864_v52  ;;  %v1865_v54 = vsel %vm1863_vm1, %v1809_v48, %v1844_v50  ;;  %v1867_v55 = vsel %vm1863_vm1, %v1821_v49, %v1856_v51  ;;  %v1883_v59 = vunpack.c.0.s8 %v1882_v57 }
 0x1c1   :  { %2525 = vtanh.f32 %v1866_v53 }
 0x1c2   :  { %2527 = vtanh.f32 %v1865_v54  ;;  %v1886_v1 = vsub.s32 %v1883_v59, %v2730_v18 }
 0x1c3   :  { %2529 = vtanh.f32 %v1867_v55 }
 0x1ca   :  { %v2524_v47 = vpop.eup %2523  ;;  %v2145_v30 = vpop.f32.mrb[4].mxu0 }
 0x1cb   :  { %v2167_v61 = vpop.f32.mrb[4].mxu1  ;;  %v2526_v62 = vpop.eup %2525 }
 0x1cc   :  { %v2146_v63 = vpop.f32.mrb[5].mxu0  ;;  %v2168_v0 = vpop.f32.mrb[5].mxu1 }
 0x1cd   :  { %v2528_v2 = vpop.eup %2527  ;;  %v2147_v3 = vadd.f32 %v2146_v63, %v2145_v30  ;;  %v2148_v4 = vpop.f32.mrb[6].mxu0  ;;  %v2169_v7 = vadd.f32 %v2168_v0, %v2167_v61 }
 0x1ce   :  { %v2170_v8 = vpop.f32.mrb[6].mxu1  ;;  %v2530_v9 = vpop.eup %2529  ;;  %v1879_v12 = vcombine.low %v2524_v47, %v2528_v2 }
 0x1cf   :  { %v2149_v10 = vpop.f32.mrb[7].mxu0  ;;  %v2171_v11 = vpop.f32.mrb[7].mxu1  ;;  %v1690_v13 = vadd.f32 %v2147_v3, %v325_v60  ;;  %v1880_v16 = vcombine.low %v2526_v62, %v2530_v9 }
 0x1d0   :  { %v2150_v14 = vadd.f32 %v2149_v10, %v2148_v4  ;;  %v2172_v15 = vadd.f32 %v2171_v11, %v2170_v8  ;;  %v1887_v21 = vrot.slane %v1879_v12, %v1886_v1 }
 0x1d1   :  { %v1731_v6 = vadd.f32 %v2169_v7, %v1690_v13  ;;  %v1894_v17 = vrot.slane %v1880_v16, %v1886_v1 }
 0x1d2   :  { %v1693_v5 = vadd.f32 %v2150_v14, %v325_v60 }
 0x1d3   :  { %v1895_v20 = vcombine.low %v1887_v21, %v1894_v17 }
 0x1d4   :  { %v1734_v19 = vadd.f32 %v2172_v15, %v1693_v5 }
 0x1d5   :  { %1905 = vst [vmem:[#allocation8] sm:$0xff] %v1895_v20 }
 0x1ea   :  { %v1771_v18 = vpop.f32.mrb[8].mxu0 }
 0x1eb   :  { %v1772_v22 = vadd.f32 %v1771_v18, %v1731_v6  ;;  %v2200_v23 = vpop.f32.mrb[9].mxu0 }
 0x1ec   :  { %v1774_v25 = vpop.f32.mrb[10].mxu0 }
 0x1ed   :  { %v1782_v26 = vmax.f32 %v1772_v22, 0.0  ;;  %v1775_v27 = vadd.f32 %v1774_v25, %v1734_v19  ;;  %v2201_v28 = vpop.f32.mrb[11].mxu0 }
 0x1ef   :  { %v1797_v29 = vadd.f32 %v1792_v24, %v1782_v26  ;;  %v1787_v31 = vmax.f32 %v1775_v27, 0.0 }
 0x1f1   :  { %v1822_v32 = vrot.slane %v1797_v29, 4  ;;  %v1832_v33 = vadd.f32 %v1792_v24, %v1787_v31 }
 0x1f3   :  { %v1823_v34 = vmax.f32 %v1797_v29, %v1822_v32  ;;  %v1857_v35 = vrot.slane %v1832_v33, 4 }
 0x1f5   :  { %v1824_v36 = vrot.slane %v1823_v34, 2  ;;  %v1858_v37 = vmax.f32 %v1832_v33, %v1857_v35 }
 0x1f7   :  { %v1825_v38 = vmax.f32 %v1823_v34, %v1824_v36  ;;  %v1859_v39 = vrot.slane %v1858_v37, 2 }
 0x1f9   :  { %v1826_v40 = vrot.slane %v1825_v38, 1  ;;  %v1860_v41 = vmax.f32 %v1858_v37, %v1859_v39 }
 0x1fb   :  { %v1861_v42 = vrot.slane %v1860_v41, 1  ;;  %v1827_v43 = vmax.f32 %v1825_v38, %v1826_v40 }
 0x1fd   :  { %v1862_v44 = vmax.f32 %v1860_v41, %v1861_v42 }
 0x1ff   :  { %v1868_v45 = vsel %vm1863_vm1, %v1827_v43, %v1862_v44 }
 0x200   :  { %2531 = vtanh.f32 %v1868_v45 }
 0x20a   :  { %v2532_v46 = vpop.eup %2531 }
 0x20b   :  { %2128 = vst.sshfl [vmem:[#allocation8 + $0x8] sm:$0x3 pattern:$0x76325410] %v2532_v46 }
 0x20c   :  { %2610 = shalt.err (!%p2607_p0)
}
 0x20d   :  { %s2611_s30 = scalar_lea.hbm %s2769_s4, 160 }
 0x20e   :  { %p2612_p1 = scmp.ne.s32.totalorder %s2769_s4, %s2611_s30  ;;  %p2615_p2 = scmp.lt.u32.totalorder %s2611_s30, %s2769_s4 }
 0x210   :  { %p2617_p3 = pnand %p2615_p2, %p2612_p1 }
 0x212   :  { %2620 = shalt.err (!%p2617_p3)
}
 0x213   :  { %1916 = dma.vmem_to_hbm [thread:$0]  %s1914_s26, 160, %s2769_s4, [#allocation4]  }
 0x214   :  { %2625 = dma.done.wait [#allocation4], 160  }
 0x215   :  { %2626 = vsyncadd [#allocation4], 4294967136 }
 0x216   :  { %1920 = vsyncpa [#allocation3], 1 }
 0x217   :  { %1921 = vsyncpa [#allocation6], 1 }
 0x218   :  { %1922 = vsyncpa [#allocation4], 1 }

</bundles_post_ra>
